<compile_context>
chip_gen: v7x
topology: tpu7x:2x2x1
jax: 0.10.0
libtpu: 0.0.40
codegen_flags: <defaults>
</compile_context>

<pallas_src>
import math

import jax
import jax.numpy as jnp
from jax.experimental import pallas as pl
from jax.experimental.pallas import tpu as pltpu

_LANES = 512  # lane-dense last dim (large multiple of 128)


def _round_up(x, m):
    return ((x + m - 1) // m) * m


def _mse_partial_kernel(o_ref, t_ref, out_ref, acc_ref):
    # acc_ref: (8, 128) f32 running partial sums, persistent across the inner
    # (reduction) grid axis.
    @pl.when(pl.program_id(1) == 0)
    def _():
        acc_ref[...] = jnp.zeros_like(acc_ref)

    d = o_ref[...].astype(jnp.float32) - t_ref[...].astype(jnp.float32)
    sq = d * d
    br, lanes = sq.shape
    # Reduce the (br, lanes) block down to one vreg (8, 128): sum only over the
    # sublane-group and lane-group axes -> pure vreg adds on the VPU (no XLU).
    partial = sq.reshape(br // 8, 8, lanes // 128, 128).sum(axis=(0, 2))
    acc_ref[...] += partial

    @pl.when(pl.program_id(1) == pl.num_programs(1) - 1)
    def _():
        out_ref[0] = acc_ref[...]


def gl2only_loss(outputs, targets, l1scaling=None):
    """F.mse_loss(outputs, targets): mean of squared element-wise differences.

    `l1scaling` matches the PyTorch module __init__ but is unused in forward.
    """
    assert outputs.shape == targets.shape
    total = math.prod(outputs.shape)
    itemsize = jnp.dtype(outputs.dtype).itemsize
    # Sublane granularity (8 for f32, 16 for bf16, 32 for int8/fp8) so packed
    # sublanes are never split across blocks.
    sub = max(8, 32 // itemsize)

    rows = -(-total // _LANES)  # ceil-div

    # Generation-aware VMEM capacity (v7x: 64 MiB; v5e/v6e: 128 MiB).
    try:
        info = pltpu.get_tpu_info()
        vmem_cap = int(getattr(info, "vmem_capacity_bytes", 64 * 1024 * 1024))
    except Exception:  # interpret mode / unknown chip -> conservative default
        vmem_cap = 64 * 1024 * 1024

    # Per-input block byte budget: 2 inputs x 2 pipeline buffers must sit
    # comfortably inside the scoped VMEM limit requested below.
    block_bytes = max(512 * 1024, min(8 * 1024 * 1024, vmem_cap // 12))

    # Use both TensorCores when there are >= 2 budget-sized blocks of work
    # (~2x streaming throughput on v7x; serializes harmlessly on 1-TC chips).
    num_par = 2 if rows * _LANES * itemsize >= 2 * block_bytes else 1

    block_rows_budget = max(sub, (block_bytes // (_LANES * itemsize)) // sub * sub)
    # Also bound zero-padding waste to roughly <= 1/8 of the real data.
    block_rows_waste = max(sub, _round_up(-(-rows // (8 * num_par)), sub))
    block_rows = min(block_rows_budget, block_rows_waste)

    rows_padded = _round_up(rows, block_rows * num_par)
    blocks_per_par = rows_padded // block_rows // num_par
    padded_total = rows_padded * _LANES

    o_flat = outputs.reshape(-1)
    t_flat = targets.reshape(-1)
    if padded_total != total:
        pad = padded_total - total
        o_flat = jnp.pad(o_flat, (0, pad))  # zeros contribute 0 to the sum
        t_flat = jnp.pad(t_flat, (0, pad))
    o2 = o_flat.reshape(rows_padded, _LANES)
    t2 = t_flat.reshape(rows_padded, _LANES)

    in_spec = pl.BlockSpec(
        (block_rows, _LANES), lambda p, i: (p * blocks_per_par + i, 0)
    )

    # Raise the scoped VMEM limit to fit the enlarged, double-buffered blocks
    # (resident <= 4 * block_bytes <= vmem_cap / 3, so this always fits).
    vmem_limit = int(min(vmem_cap * 3 // 4, 100 * 1024 * 1024))

    partials = pl.pallas_call(
        _mse_partial_kernel,
        out_shape=jax.ShapeDtypeStruct((num_par, 8, 128), jnp.float32),
        grid_spec=pltpu.PrefetchScalarGridSpec(
            num_scalar_prefetch=0,
            grid=(num_par, blocks_per_par),
            in_specs=[in_spec, in_spec],
            out_specs=pl.BlockSpec((1, 8, 128), lambda p, i: (p, 0, 0)),
            scratch_shapes=[pltpu.VMEM((8, 128), jnp.float32)],
        ),
        compiler_params=pltpu.CompilerParams(
            dimension_semantics=("parallel", "arbitrary"),
            vmem_limit_bytes=vmem_limit,
        ),
    )(o2, t2)

    # Single cross-lane/sublane reduce, done once outside the kernel; divide by
    # the TRUE (unpadded) element count.
    return jnp.sum(partials) / jnp.float32(total)


if __name__ == "__main__":
    key = jax.random.PRNGKey(0)
    k1, k2 = jax.random.split(key)

    # Small shapes consistent with an image-deblur loss: NCHW.
    outputs = jax.random.normal(k1, (2, 4, 16, 16), dtype=jnp.float32)
    targets = jax.random.normal(k2, (2, 4, 16, 16), dtype=jnp.float32)

    # l1scaling is part of the module __init__ but unused in forward.
    loss = gl2only_loss(outputs, targets, l1scaling=1.0)
    loss = jax.block_until_ready(loss)

    # Sanity check against plain JAX reference (same semantics as F.mse_loss).
    ref = jnp.mean((outputs - targets) ** 2)
    assert jnp.allclose(loss, ref, rtol=1e-5, atol=1e-6), (loss, ref)

    print("KERNEL_OK")
</pallas_src>

<mosaic_0001>
module attributes {stable_mosaic.version = 11 : i64} {
  func.func @_mse_partial_kernel(%arg0: i32, %arg1: i32, %arg2: memref<8x512xf32, #tpu.memory_space<vmem>>, %arg3: memref<8x512xf32, #tpu.memory_space<vmem>>, %arg4: memref<1x8x128xf32, #tpu.memory_space<vmem>>, %arg5: memref<8x128xf32, #tpu.memory_space<vmem>>) attributes {dimension_semantics = [#tpu.dimension_semantics<parallel>, #tpu.dimension_semantics<arbitrary>], iteration_bounds = array<i64: 1, 1>, scalar_prefetch = 0 : i64, scratch_operands = 1 : i64, tpu.core_type = #tpu.core_type<tc>, window_params = [{transform_indices = @transform_0, window_bounds = array<i64: 8, 512>}, {transform_indices = @transform_1, window_bounds = array<i64: 8, 512>}, {transform_indices = @transform_2, window_bounds = array<i64: 1, 8, 128>}]} {
    %c0_i32 = arith.constant 0 : i32
    %0 = arith.cmpi eq, %arg1, %c0_i32 : i32
    %1 = arith.extui %0 : i1 to i32
    %c0_i32_0 = arith.constant 0 : i32
    %2 = arith.cmpi ne, %1, %c0_i32_0 : i32
    scf.if %2 {
      %cst_10 = arith.constant 0.000000e+00 : f32
      %15 = vector.broadcast %cst_10 : f32 to vector<8x128xf32>
      %c0_11 = arith.constant 0 : index
      %c0_12 = arith.constant 0 : index
      %16 = vector.load %arg5[%c0_11, %c0_12] : memref<8x128xf32, #tpu.memory_space<vmem>>, vector<8x128xf32>
      tpu.vector_store %arg5[%c0_11, %c0_12], %15 {strides = array<i32>} : memref<8x128xf32, #tpu.memory_space<vmem>>, vector<8x128xf32>,
    } else {
    }
    %c0 = arith.constant 0 : index
    %c0_1 = arith.constant 0 : index
    %3 = vector.load %arg2[%c0, %c0_1] : memref<8x512xf32, #tpu.memory_space<vmem>>, vector<8x512xf32>
    %c0_2 = arith.constant 0 : index
    %c0_3 = arith.constant 0 : index
    %4 = vector.load %arg3[%c0_2, %c0_3] : memref<8x512xf32, #tpu.memory_space<vmem>>, vector<8x512xf32>
    %5 = arith.subf %3, %4 : vector<8x512xf32>
    %6 = arith.mulf %5, %5 : vector<8x512xf32>
    %7 = vector.shape_cast %6 : vector<8x512xf32> to vector<1x8x4x128xf32>
    %cst = arith.constant dense<0.000000e+00> : vector<8x128xf32>
    %8 = vector.multi_reduction <add>, %7, %cst [0, 2] : vector<1x8x4x128xf32> to vector<8x128xf32>
    %c0_4 = arith.constant 0 : index
    %c0_5 = arith.constant 0 : index
    %9 = vector.load %arg5[%c0_4, %c0_5] : memref<8x128xf32, #tpu.memory_space<vmem>>, vector<8x128xf32>
    %10 = arith.addf %9, %8 : vector<8x128xf32>
    %c0_6 = arith.constant 0 : index
    %c0_7 = arith.constant 0 : index
    %11 = vector.load %arg5[%c0_6, %c0_7] : memref<8x128xf32, #tpu.memory_space<vmem>>, vector<8x128xf32>
    tpu.vector_store %arg5[%c0_6, %c0_7], %10 {strides = array<i32>} : memref<8x128xf32, #tpu.memory_space<vmem>>, vector<8x128xf32>,
    %c0_i32_8 = arith.constant 0 : i32
    %12 = arith.cmpi eq, %arg1, %c0_i32_8 : i32
    %13 = arith.extui %12 : i1 to i32
    %c0_i32_9 = arith.constant 0 : i32
    %14 = arith.cmpi ne, %13, %c0_i32_9 : i32
    scf.if %14 {
      %c0_10 = arith.constant 0 : index
      %c0_11 = arith.constant 0 : index
      %15 = vector.load %arg5[%c0_10, %c0_11] : memref<8x128xf32, #tpu.memory_space<vmem>>, vector<8x128xf32>
      %c0_12 = arith.constant 0 : index
      %c0_13 = arith.constant 0 : index
      %c0_14 = arith.constant 0 : index
      %16 = vector.load %arg4[%c0_12, %c0_13, %c0_14] : memref<1x8x128xf32, #tpu.memory_space<vmem>>, vector<1x8x128xf32>
      %17 = vector.shape_cast %16 : vector<1x8x128xf32> to vector<8x128xf32>
      %18 = vector.shape_cast %15 : vector<8x128xf32> to vector<1x8x128xf32>
      tpu.vector_store %arg4[%c0_12, %c0_13, %c0_14], %18 {strides = array<i32>} : memref<1x8x128xf32, #tpu.memory_space<vmem>>, vector<1x8x128xf32>,
    } else {
    }
    return
  }
  func.func @transform_0(%arg0: i32, %arg1: i32) -> (i32, i32) {
    %c1_i32 = arith.constant 1 : i32
    %0 = arith.muli %arg0, %c1_i32 : i32
    %1 = arith.addi %0, %arg1 : i32
    %c0_i32 = arith.constant 0 : i32
    %c0_i32_0 = arith.constant 0 : i32
    return %1, %c0_i32 : i32, i32
  }
  func.func @transform_1(%arg0: i32, %arg1: i32) -> (i32, i32) {
    %c1_i32 = arith.constant 1 : i32
    %0 = arith.muli %arg0, %c1_i32 : i32
    %1 = arith.addi %0, %arg1 : i32
    %c0_i32 = arith.constant 0 : i32
    %c0_i32_0 = arith.constant 0 : i32
    return %1, %c0_i32 : i32, i32
  }
  func.func @transform_2(%arg0: i32, %arg1: i32) -> (i32, i32, i32) {
    %c0_i32 = arith.constant 0 : i32
    %c0_i32_0 = arith.constant 0 : i32
    %c0_i32_1 = arith.constant 0 : i32
    return %arg0, %c0_i32, %c0_i32_0 : i32, i32, i32
  }
}

</mosaic_0001>

<bundles_post_ra>
// kernel: tpu_custom_call.1
= control target key start
LH: loop header
LB: loop body
LE: loop exit
PB: predicated region body
PF: predicated region fallthrough
CT: control target
= control target key end

     0   :  { %7 = vsyncpa [#allocation4], 0  ;;  %s383_s0 = inlined_call_operand.hbm [shape: f32[8,512], index: 0, kind: input, shape index: {}]   ;;  %s384_s1 = inlined_call_operand.hbm [shape: f32[8,512], index: 1, kind: input, shape index: {}]   ;;  %s385_s2 = inlined_call_operand.hbm [shape: f32[1,8,128], index: 2, kind: output, shape index: {}]  }
   0x1   :  { %8 = vsyncpa [#allocation7], 0 }
   0x2   :  { %9 = vsyncpa [#allocation5], 0  ;;  %s317_s9 = smov [#allocation3]   ;;  %s318_s11 = smov [#allocation6]  }
   0x3   :  { %s20_s10 = sshll.u32 %s317_s9, 4  ;;  %s34_s12 = sshll.u32 %s318_s11, 4  ;;  %s21_s10 = int_to_ptr.vmem [resolvable:$true] %s20_s10  ;;  %s35_s12 = int_to_ptr.vmem [resolvable:$true] %s34_s12 }
   0x4   :  { %s245_s15 = scalar_lea.hbm %s383_s0, 512 }
   0x5   :  { %p246_p0 = scmp.ne.s32.totalorder %s383_s0, %s245_s15  ;;  %p249_p1 = scmp.lt.u32.totalorder %s245_s15, %s383_s0 }
   0x7   :  { %p251_p2 = pnand %p249_p1, %p246_p0 }
   0x9   :  { %254 = shalt.err (!%p251_p2)
}
   0xa   :  { %s255_s20 = scalar_lea.vmem %s21_s10, 512  ;;  %p260_p4 = scmp.lt.s32.totalorder %s21_s10, %s21_s10 }
   0xb   :  { %p256_p3 = scmp.ne.s32.totalorder %s21_s10, %s255_s20  ;;  %p261_p5 = scmp.lt.s32.totalorder %s255_s20, %s255_s20 }
   0xd   :  { %p262_p6 = por %p261_p5, %p260_p4 }
   0xf   :  { %p263_p7 = pnand %p262_p6, %p256_p3 }
  0x11   :  { %266 = shalt.err (!%p263_p7)
}
  0x12   :  { %23 = dma.hbm_to_vmem [thread:$0]  %s383_s0, 512, %s21_s10, [#allocation4]  }
  0x13   :  { %s267_s25 = scalar_lea.hbm %s384_s1, 512 }
  0x14   :  { %p268_p8 = scmp.ne.s32.totalorder %s384_s1, %s267_s25  ;;  %p271_p9 = scmp.lt.u32.totalorder %s267_s25, %s384_s1 }
  0x16   :  { %p273_p10 = pnand %p271_p9, %p268_p8 }
  0x18   :  { %276 = shalt.err (!%p273_p10)
}
  0x19   :  { %s277_s30 = scalar_lea.vmem %s35_s12, 512  ;;  %p282_p12 = scmp.lt.s32.totalorder %s35_s12, %s35_s12 }
  0x1a   :  { %p278_p11 = scmp.ne.s32.totalorder %s35_s12, %s277_s30  ;;  %p283_p13 = scmp.lt.s32.totalorder %s277_s30, %s277_s30 }
  0x1c   :  { %p284_p0 = por %p283_p13, %p282_p12 }
  0x1e   :  { %p285_p1 = pnand %p284_p0, %p278_p11 }
  0x20   :  { %288 = shalt.err (!%p285_p1)
}
  0x21   :  { %37 = dma.hbm_to_vmem [thread:$0]  %s384_s1, 512, %s35_s12, [#allocation7]  }
  0x22   :  { %311 = dma.done.wait [#allocation4], 512  }
  0x23   :  { %312 = vsyncadd [#allocation4], 4294966784 }
  0x24   :  { %313 = dma.done.wait [#allocation7], 512  }
  0x25   :  { %314 = vsyncadd [#allocation7], 4294966784  ;;  %v319_v0 = vmov 1983009808   ;;  %v72_v2 = vlaneseq  ;;  %v51_v3 = vld [vmem:[#allocation3] sm:$0xff]  ;;  %v52_v4 = vld [vmem:[#allocation3 + $0x8] sm:$0xff] }
  0x26   :  { %v70_v1 = vunpack.c.l.s4 %v319_v0  ;;  %v53_v5 = vld [vmem:[#allocation3 + $0x10] sm:$0xff]  ;;  %v320_v6 = vmov 1934713408   ;;  %v54_v8 = vld [vmem:[#allocation3 + $0x18] sm:$0xff]  ;;  %v55_v9 = vld [vmem:[#allocation6] sm:$0xff]  ;;  %vm135_vm0 = vcmask 1043456  }
  0x27   :  { %v102_v7 = vunpack.c.l.s4 %v320_v6  ;;  %v56_v10 = vld [vmem:[#allocation6 + $0x8] sm:$0xff]  ;;  %v73_v12 = vshrl.u32 %v72_v2, 7  ;;  %v57_v13 = vld [vmem:[#allocation6 + $0x10] sm:$0xff]  ;;  %v58_v14 = vld [vmem:[#allocation6 + $0x18] sm:$0xff]  ;;  %v59_v15 = vsub.f32 %v51_v3, %v55_v9  ;;  %v321_v42 = vmov 0.0   ;;  %s322_s1 = smov [#allocation8]  }
  0x28   :  { %v71_v11 = vunpack.c.0.s8 %v70_v1  ;;  %v60_v16 = vsub.f32 %v52_v4, %v56_v10  ;;  %v61_v17 = vsub.f32 %v53_v5, %v57_v13  ;;  %v62_v18 = vsub.f32 %v54_v8, %v58_v14  ;;  %s229_s4 = sshll.u32 %s322_s1, 4  ;;  %s230_s4 = int_to_ptr.vmem [resolvable:$true] %s229_s4 }
  0x29   :  { %v63_v19 = vmul.f32 %v59_v15, %v59_v15  ;;  %v103_v21 = vunpack.c.0.s8 %v102_v7  ;;  %vm201_vm1 = vcmask 1041409   ;;  %vm203_vm2 = vcmask 1042434   ;;  %s289_s5 = scalar_lea.vmem %s230_s4, 128  ;;  %p294_p3 = scmp.lt.s32.totalorder %s230_s4, %s230_s4 }
  0x2a   :  { %v64_v20 = vmul.f32 %v60_v16, %v60_v16  ;;  %v65_v22 = vmul.f32 %v61_v17, %v61_v17  ;;  %v66_v23 = vmul.f32 %v62_v18, %v62_v18  ;;  %v74_v24 = vsub.s32 %v71_v11, %v73_v12  ;;  %p290_p2 = scmp.ne.s32.totalorder %s230_s4, %s289_s5  ;;  %p295_p4 = scmp.lt.s32.totalorder %s289_s5, %s289_s5 }
  0x2b   :  { %v106_v29 = vsub.s32 %v103_v21, %v73_v12  ;;  %vm205_vm3 = vcmask 1043459   ;;  %vm207_vm4 = vcmask 1044484   ;;  %vm209_vm5 = vcmask 1045509  }
  0x2c   :  { %v67_v25 = vcombine.low %v63_v19, %v65_v22  ;;  %v68_v26 = vcombine.high %v63_v19, %v65_v22  ;;  %v83_v27 = vcombine.low %v64_v20, %v66_v23  ;;  %v84_v28 = vcombine.high %v64_v20, %v66_v23  ;;  %p296_p5 = por %p295_p4, %p294_p3 }
  0x2d   :  { %vm211_vm6 = vcmask 1046534   ;;  %vm213_vm7 = vcmask 1047559  }
  0x2e   :  { %v75_v30 = vrot.slane %v67_v25, %v74_v24  ;;  %v82_v31 = vrot.slane %v68_v26, %v74_v24  ;;  %v91_v32 = vrot.slane %v83_v27, %v74_v24  ;;  %v98_v33 = vrot.slane %v84_v28, %v74_v24  ;;  %p297_p6 = pnand %p296_p5, %p290_p2 }
  0x30   :  { %v99_v34 = vcombine.low %v75_v30, %v91_v32  ;;  %v100_v35 = vcombine.high %v75_v30, %v91_v32  ;;  %v115_v36 = vcombine.low %v82_v31, %v98_v33  ;;  %v116_v37 = vcombine.high %v82_v31, %v98_v33 }
  0x32   :  { %v107_v38 = vrot.slane %v99_v34, %v106_v29  ;;  %v114_v39 = vrot.slane %v100_v35, %v106_v29  ;;  %v123_v40 = vrot.slane %v115_v36, %v106_v29  ;;  %v130_v41 = vrot.slane %v116_v37, %v106_v29 }
  0x34   :  { %v131_v43 = vcombine.high %v107_v38, %v321_v42  ;;  %v132_v44 = vcombine.high %v114_v39, %v321_v42  ;;  %v133_v45 = vcombine.high %v123_v40, %v321_v42  ;;  %v134_v46 = vcombine.high %v130_v41, %v321_v42 }
  0x35   :  { %v136_v47 = vsel %vm135_vm0, %v107_v38, 0.0  ;;  %v150_v48 = vsel %vm135_vm0, %v114_v39, 0.0  ;;  %v164_v49 = vsel %vm135_vm0, %v123_v40, 0.0  ;;  %v178_v50 = vsel %vm135_vm0, %v130_v41, 0.0 }
  0x36   :  { %v137_v51 = vrot.slane %v136_v47, 4  ;;  %v143_v52 = vsel %vm135_vm0, %v131_v43, 0.0  ;;  %v151_v53 = vrot.slane %v150_v48, 4  ;;  %v157_v54 = vsel %vm135_vm0, %v132_v44, 0.0 }
  0x37   :  { %v144_v55 = vrot.slane %v143_v52, 4  ;;  %v158_v56 = vrot.slane %v157_v54, 4  ;;  %v165_v57 = vrot.slane %v164_v49, 4  ;;  %v171_v58 = vsel %vm135_vm0, %v133_v45, 0.0 }
  0x38   :  { %v138_v59 = vadd.f32 %v137_v51, %v136_v47  ;;  %v152_v60 = vadd.f32 %v151_v53, %v150_v48  ;;  %v172_v61 = vrot.slane %v171_v58, 4  ;;  %v179_v62 = vrot.slane %v178_v50, 4 }
  0x39   :  { %v145_v63 = vadd.f32 %v144_v55, %v143_v52  ;;  %v159_v0 = vadd.f32 %v158_v56, %v157_v54  ;;  %v166_v1 = vadd.f32 %v165_v57, %v164_v49  ;;  %v185_v2 = vsel %vm135_vm0, %v134_v46, 0.0 }
  0x3a   :  { %v139_v3 = vrot.slane %v138_v59, 2  ;;  %v153_v4 = vrot.slane %v152_v60, 2  ;;  %v173_v5 = vadd.f32 %v172_v61, %v171_v58  ;;  %v180_v6 = vadd.f32 %v179_v62, %v178_v50 }
  0x3b   :  { %v146_v7 = vrot.slane %v145_v63, 2  ;;  %v160_v8 = vrot.slane %v159_v0, 2  ;;  %v167_v9 = vrot.slane %v166_v1, 2  ;;  %v186_v10 = vrot.slane %v185_v2, 4 }
  0x3c   :  { %v140_v11 = vadd.f32 %v139_v3, %v138_v59  ;;  %v154_v12 = vadd.f32 %v153_v4, %v152_v60  ;;  %v174_v13 = vrot.slane %v173_v5, 2  ;;  %v181_v14 = vrot.slane %v180_v6, 2 }
  0x3d   :  { %v147_v15 = vadd.f32 %v146_v7, %v145_v63  ;;  %v161_v16 = vadd.f32 %v160_v8, %v159_v0  ;;  %v168_v17 = vadd.f32 %v167_v9, %v166_v1  ;;  %v187_v18 = vadd.f32 %v186_v10, %v185_v2 }
  0x3e   :  { %v141_v19 = vrot.slane %v140_v11, 1  ;;  %v155_v20 = vrot.slane %v154_v12, 1  ;;  %v175_v21 = vadd.f32 %v174_v13, %v173_v5  ;;  %v182_v22 = vadd.f32 %v181_v14, %v180_v6 }
  0x3f   :  { %v148_v23 = vrot.slane %v147_v15, 1  ;;  %v162_v24 = vrot.slane %v161_v16, 1  ;;  %v169_v25 = vrot.slane %v168_v17, 1  ;;  %v188_v26 = vrot.slane %v187_v18, 2 }
  0x40   :  { %v142_v27 = vadd.f32 %v141_v19, %v140_v11  ;;  %v156_v28 = vadd.f32 %v155_v20, %v154_v12  ;;  %v176_v29 = vrot.slane %v175_v21, 1  ;;  %v183_v30 = vrot.slane %v182_v22, 1 }
  0x41   :  { %v149_v31 = vadd.f32 %v148_v23, %v147_v15  ;;  %v163_v32 = vadd.f32 %v162_v24, %v161_v16  ;;  %v189_v33 = vadd.f32 %v188_v26, %v187_v18  ;;  %v170_v34 = vadd.f32 %v169_v25, %v168_v17 }
  0x42   :  { %v177_v35 = vadd.f32 %v176_v29, %v175_v21  ;;  %v184_v38 = vadd.f32 %v183_v30, %v182_v22 }
  0x43   :  { %v190_v36 = vrot.slane %v189_v33, 1  ;;  %v202_v37 = vsel %vm201_vm1, %v149_v31, %v142_v27 }
  0x44   :  { %v204_v39 = vsel %vm203_vm2, %v156_v28, %v202_v37 }
  0x45   :  { %v191_v40 = vadd.f32 %v190_v36, %v189_v33  ;;  %v206_v41 = vsel %vm205_vm3, %v163_v32, %v204_v39 }
  0x46   :  { %v208_v42 = vsel %vm207_vm4, %v170_v34, %v206_v41 }
  0x47   :  { %v210_v43 = vsel %vm209_vm5, %v177_v35, %v208_v42 }
  0x48   :  { %v212_v44 = vsel %vm211_vm6, %v184_v38, %v210_v43 }
  0x49   :  { %v214_v45 = vsel %vm213_vm7, %v191_v40, %v212_v44 }
  0x4a   :  { %222 = vst [vmem:[#allocation8] sm:$0xff] %v214_v45 }
  0x4b   :  { %300 = shalt.err (!%p297_p6)
}
  0x4c   :  { %s301_s8 = scalar_lea.hbm %s385_s2, 128 }
  0x4d   :  { %p302_p7 = scmp.ne.s32.totalorder %s385_s2, %s301_s8  ;;  %p305_p8 = scmp.lt.u32.totalorder %s301_s8, %s385_s2 }
  0x4f   :  { %p307_p9 = pnand %p305_p8, %p302_p7 }
  0x51   :  { %310 = shalt.err (!%p307_p9)
}
  0x52   :  { %232 = dma.vmem_to_hbm [thread:$0]  %s230_s4, 128, %s385_s2, [#allocation5]  }
  0x53   :  { %315 = dma.done.wait [#allocation5], 128  }
  0x54   :  { %316 = vsyncadd [#allocation5], 4294967168 }
  0x55   :  { %236 = vsyncpa [#allocation4], 1 }
  0x56   :  { %237 = vsyncpa [#allocation7], 1 }
  0x57   :  { %238 = vsyncpa [#allocation5], 1 }

</bundles_post_ra>
